<compile_context>
chip_gen: v7x
topology: tpu7x:2x2x1
jax: 0.10.0
libtpu: 0.0.40
codegen_flags: <defaults>
</compile_context>

<pallas_src>
import functools

import jax
import jax.numpy as jnp
from jax.experimental import pallas as pl
from jax.experimental.pallas import tpu as pltpu


def _conv_bn_act_kernel(x_ref, w_ref, scale_ref, bias_ref, o_ref, *,
                        kh, kw, stride, neg_slope, apply_act):
    # x_ref:     (1, Hp, Wp, C1)        whole padded image of one batch element
    # w_ref:     (KH*KW*C1, C2)         taps folded into the contraction dim
    # scale_ref: (1, C2)                gamma / sqrt(var + eps)
    # bias_ref:  (1, C2)                beta - mean * scale
    # o_ref:     (1, TILE_H, Wo, C2)    one output row tile
    _, hp, wp, c1 = x_ref.shape
    _, th, wo, c2 = o_ref.shape
    m = th * wo

    t = pl.program_id(1)
    row0 = pl.multiple_of(t * (th * stride), th * stride)

    # Build the im2col block for this row tile from Ref slices (no full-image
    # value), then contract over all taps and input channels in ONE matmul.
    pieces = []
    for ih in range(kh):
        if stride == 1:
            win = x_ref[:, pl.ds(row0 + ih, th), :, :]          # (1, TH, Wp, C1)
        else:
            span = stride * (th - 1) + 1
            full = x_ref[:, pl.ds(row0 + ih, span), :, :]
            win = jax.lax.slice(full, (0, 0, 0, 0), (1, span, wp, c1),
                                (1, stride, 1, 1))               # (1, TH, Wp, C1)
        for iw in range(kw):
            if stride == 1:
                patch = win[:, :, iw:iw + wo, :]                 # (1, TH, Wo, C1)
            else:
                patch = jax.lax.slice(
                    win, (0, 0, iw, 0),
                    (1, th, iw + stride * (wo - 1) + 1, c1),
                    (1, 1, stride, 1))
            pieces.append(patch.reshape(m, c1))                  # (M, C1)

    if len(pieces) == 1:
        im2col = pieces[0]
    else:
        im2col = jnp.concatenate(pieces, axis=1)                 # (M, KH*KW*C1)

    acc = jnp.dot(im2col, w_ref[...],
                  preferred_element_type=jnp.float32)            # (M, C2)

    y = acc * scale_ref[...] + bias_ref[...]                     # fused BN
    if apply_act:
        y = jnp.where(y > 0, y, neg_slope * y)                   # LeakyReLU(0.1)
    o_ref[...] = y.reshape(1, th, wo, c2).astype(o_ref.dtype)


def _pick_row_tile(ho, wo, target_positions=4096):
    """Largest divisor of Ho keeping the per-tile spatial size modest."""
    best = 1
    for th in range(1, ho + 1):
        if ho % th == 0 and th * wo <= target_positions:
            best = th
    return best


def conv_bn_act(x_nchw, w_oihw, gamma, beta, running_mean, running_var, *,
                stride=1, padding=None, groups=1, eps=1e-5, neg_slope=0.1,
                apply_act=True, row_tile=None):
    """Fused Conv2d(bias=False, groups=1) + BatchNorm2d(eval) + LeakyReLU(0.1)."""
    n, c1, h, w = x_nchw.shape
    c2, c1_w, kh, kw = w_oihw.shape
    assert groups == 1 and c1 == c1_w  # TODO(synk): grouped conv (g > 1)
    if padding is None:
        padding = kh // 2  # autopad

    ho = (h + 2 * padding - kh) // stride + 1
    wo = (w + 2 * padding - kw) // stride + 1
    hp, wp = h + 2 * padding, w + 2 * padding

    if row_tile is None:
        row_tile = _pick_row_tile(ho, wo)
    assert ho % row_tile == 0, "row_tile must divide the output height"
    n_row_tiles = ho // row_tile

    f32 = jnp.float32
    # ---- wrapper glue (plain JAX): layout, padding, BN folding ----
    # TODO(synk): keep NCHW end-to-end (lane-dense spatial output) to drop
    # these two full-tensor transposes.
    x_nhwc = jnp.transpose(x_nchw, (0, 2, 3, 1)).astype(f32)
    x_pad = jnp.pad(x_nhwc, ((0, 0), (padding, padding), (padding, padding), (0, 0)))
    # Weights with taps folded into the contraction dim, ordered (ih, iw, c):
    w2d = jnp.transpose(w_oihw.astype(f32), (2, 3, 1, 0)).reshape(kh * kw * c1, c2)
    scale = (gamma.astype(f32) / jnp.sqrt(running_var.astype(f32) + eps))
    bias = beta.astype(f32) - running_mean.astype(f32) * scale
    scale = scale.reshape(1, c2)
    bias = bias.reshape(1, c2)

    kernel = functools.partial(
        _conv_bn_act_kernel, kh=kh, kw=kw, stride=stride,
        neg_slope=neg_slope, apply_act=apply_act)

    # Explicit VMEM budget (generous headroom; capped for v7x's 64 MiB VMEM).
    blk_bytes = 4 * (hp * wp * c1                      # input block
                     + kh * kw * c1 * c2 + 2 * c2      # weights + scale/bias
                     + row_tile * wo * c2              # output block
                     + row_tile * wo * kh * kw * c1)   # im2col working set
    vmem_limit = int(min(max(8 * blk_bytes, 32 * 2**20), 48 * 2**20))

    out_nhwc = pl.pallas_call(
        kernel,
        out_shape=jax.ShapeDtypeStruct((n, ho, wo, c2), f32),
        grid_spec=pltpu.PrefetchScalarGridSpec(
            num_scalar_prefetch=0,
            grid=(n, n_row_tiles),
            in_specs=[
                pl.BlockSpec((1, hp, wp, c1), lambda b, t: (b, 0, 0, 0)),
                pl.BlockSpec((kh * kw * c1, c2), lambda b, t: (0, 0)),
                pl.BlockSpec((1, c2), lambda b, t: (0, 0)),
                pl.BlockSpec((1, c2), lambda b, t: (0, 0)),
            ],
            out_specs=pl.BlockSpec((1, row_tile, wo, c2),
                                   lambda b, t: (b, t, 0, 0)),
        ),
        compiler_params=pltpu.CompilerParams(
            dimension_semantics=("parallel", "parallel"),
            vmem_limit_bytes=vmem_limit),
    )(x_pad, w2d, scale, bias)

    return jnp.transpose(out_nhwc, (0, 3, 1, 2))  # back to NCHW


def _reference(x_nchw, w_oihw, gamma, beta, mean, var, *, stride, padding, eps,
               neg_slope):
    y = jax.lax.conv_general_dilated(
        x_nchw.astype(jnp.float32), w_oihw.astype(jnp.float32),
        window_strides=(stride, stride),
        padding=((padding, padding), (padding, padding)),
        dimension_numbers=("NCHW", "OIHW", "NCHW"))
    scale = gamma / jnp.sqrt(var + eps)
    y = y * scale[None, :, None, None] + (beta - mean * scale)[None, :, None, None]
    return jnp.where(y > 0, y, neg_slope * y)


if __name__ == "__main__":
    key = jax.random.PRNGKey(0)
    k_x, k_w3, k_w1, k_g, k_b, k_m, k_v = jax.random.split(key, 7)

    N, C1, C2, H, W = 2, 4, 8, 16, 16
    x = jax.random.normal(k_x, (N, C1, H, W), dtype=jnp.float32)

    gamma = 1.0 + 0.1 * jax.random.normal(k_g, (C2,), dtype=jnp.float32)
    beta = 0.1 * jax.random.normal(k_b, (C2,), dtype=jnp.float32)
    running_mean = 0.1 * jax.random.normal(k_m, (C2,), dtype=jnp.float32)
    running_var = 0.5 + jnp.abs(jax.random.normal(k_v, (C2,), dtype=jnp.float32))

    # Conv(c1=4, c2=8, k=3, s=1) with explicit row tiling (grid = (2, 2)).
    w3 = 0.1 * jax.random.normal(k_w3, (C2, C1, 3, 3), dtype=jnp.float32)
    out3 = conv_bn_act(x, w3, gamma, beta, running_mean, running_var,
                       stride=1, row_tile=8)
    out3 = jax.block_until_ready(out3)
    ref3 = _reference(x, w3, gamma, beta, running_mean, running_var,
                      stride=1, padding=1, eps=1e-5, neg_slope=0.1)
    assert out3.shape == (N, C2, H, W)
    assert jnp.allclose(out3, ref3, atol=1e-4, rtol=1e-4)

    # Module-default pointwise Conv(k=1, s=1), auto row tile.
    w1 = 0.1 * jax.random.normal(k_w1, (C2, C1, 1, 1), dtype=jnp.float32)
    out1 = conv_bn_act(x, w1, gamma, beta, running_mean, running_var, stride=1)
    out1 = jax.block_until_ready(out1)
    ref1 = _reference(x, w1, gamma, beta, running_mean, running_var,
                      stride=1, padding=0, eps=1e-5, neg_slope=0.1)
    assert out1.shape == (N, C2, H, W)
    assert jnp.allclose(out1, ref1, atol=1e-4, rtol=1e-4)

    print("KERNEL_OK")
</pallas_src>

<mosaic_0001>
module attributes {stable_mosaic.version = 11 : i64} {
  func.func @_conv_bn_act_kernel(%arg0: i32, %arg1: i32, %arg2: memref<1x18x18x4xf32, #tpu.memory_space<vmem>>, %arg3: memref<36x8xf32, #tpu.memory_space<vmem>>, %arg4: memref<1x8xf32, #tpu.memory_space<vmem>>, %arg5: memref<1x8xf32, #tpu.memory_space<vmem>>, %arg6: memref<1x8x16x8xf32, #tpu.memory_space<vmem>>) attributes {dimension_semantics = [#tpu.dimension_semantics<parallel>, #tpu.dimension_semantics<parallel>], iteration_bounds = array<i64: 2, 2>, scalar_prefetch = 0 : i64, scratch_operands = 0 : i64, tpu.core_type = #tpu.core_type<tc>, window_params = [{transform_indices = @transform_0, window_bounds = array<i64: 1, 18, 18, 4>}, {pipeline_mode = #tpu.pipeline_mode<synchronous>, transform_indices = @transform_1, window_bounds = array<i64: 36, 8>}, {pipeline_mode = #tpu.pipeline_mode<synchronous>, transform_indices = @transform_2, window_bounds = array<i64: 1, 8>}, {pipeline_mode = #tpu.pipeline_mode<synchronous>, transform_indices = @transform_3, window_bounds = array<i64: 1, 8>}, {transform_indices = @transform_4, window_bounds = array<i64: 1, 8, 16, 8>}]} {
    %c8_i32 = arith.constant 8 : i32
    %0 = arith.muli %arg1, %c8_i32 : i32
    %1 = tpu.assume_multiple %0, 8 : i32
    %c0_i32 = arith.constant 0 : i32
    %2 = arith.addi %1, %c0_i32 : i32
    %c0 = arith.constant 0 : index
    %3 = arith.index_cast %2 : i32 to index
    %c0_0 = arith.constant 0 : index
    %c0_1 = arith.constant 0 : index
    %4 = vector.load %arg2[%c0, %3, %c0_0, %c0_1] : memref<1x18x18x4xf32, #tpu.memory_space<vmem>>, vector<1x8x18x4xf32>
    %5 = vector.extract_strided_slice %4 {offsets = [0, 0, 0, 0], sizes = [1, 8, 16, 4], strides = [1, 1, 1, 1]} : vector<1x8x18x4xf32> to vector<1x8x16x4xf32>
    %6 = vector.shape_cast %5 : vector<1x8x16x4xf32> to vector<128x4xf32>
    %7 = vector.extract_strided_slice %4 {offsets = [0, 0, 1, 0], sizes = [1, 8, 16, 4], strides = [1, 1, 1, 1]} : vector<1x8x18x4xf32> to vector<1x8x16x4xf32>
    %8 = vector.shape_cast %7 : vector<1x8x16x4xf32> to vector<128x4xf32>
    %9 = vector.extract_strided_slice %4 {offsets = [0, 0, 2, 0], sizes = [1, 8, 16, 4], strides = [1, 1, 1, 1]} : vector<1x8x18x4xf32> to vector<1x8x16x4xf32>
    %10 = vector.shape_cast %9 : vector<1x8x16x4xf32> to vector<128x4xf32>
    %c1_i32 = arith.constant 1 : i32
    %11 = arith.addi %1, %c1_i32 : i32
    %c0_2 = arith.constant 0 : index
    %12 = arith.index_cast %11 : i32 to index
    %c0_3 = arith.constant 0 : index
    %c0_4 = arith.constant 0 : index
    %13 = vector.load %arg2[%c0_2, %12, %c0_3, %c0_4] : memref<1x18x18x4xf32, #tpu.memory_space<vmem>>, vector<1x8x18x4xf32>
    %14 = vector.extract_strided_slice %13 {offsets = [0, 0, 0, 0], sizes = [1, 8, 16, 4], strides = [1, 1, 1, 1]} : vector<1x8x18x4xf32> to vector<1x8x16x4xf32>
    %15 = vector.shape_cast %14 : vector<1x8x16x4xf32> to vector<128x4xf32>
    %16 = vector.extract_strided_slice %13 {offsets = [0, 0, 1, 0], sizes = [1, 8, 16, 4], strides = [1, 1, 1, 1]} : vector<1x8x18x4xf32> to vector<1x8x16x4xf32>
    %17 = vector.shape_cast %16 : vector<1x8x16x4xf32> to vector<128x4xf32>
    %18 = vector.extract_strided_slice %13 {offsets = [0, 0, 2, 0], sizes = [1, 8, 16, 4], strides = [1, 1, 1, 1]} : vector<1x8x18x4xf32> to vector<1x8x16x4xf32>
    %19 = vector.shape_cast %18 : vector<1x8x16x4xf32> to vector<128x4xf32>
    %c2_i32 = arith.constant 2 : i32
    %20 = arith.addi %1, %c2_i32 : i32
    %c0_5 = arith.constant 0 : index
    %21 = arith.index_cast %20 : i32 to index
    %c0_6 = arith.constant 0 : index
    %c0_7 = arith.constant 0 : index
    %22 = vector.load %arg2[%c0_5, %21, %c0_6, %c0_7] : memref<1x18x18x4xf32, #tpu.memory_space<vmem>>, vector<1x8x18x4xf32>
    %23 = vector.extract_strided_slice %22 {offsets = [0, 0, 0, 0], sizes = [1, 8, 16, 4], strides = [1, 1, 1, 1]} : vector<1x8x18x4xf32> to vector<1x8x16x4xf32>
    %24 = vector.shape_cast %23 : vector<1x8x16x4xf32> to vector<128x4xf32>
    %25 = vector.extract_strided_slice %22 {offsets = [0, 0, 1, 0], sizes = [1, 8, 16, 4], strides = [1, 1, 1, 1]} : vector<1x8x18x4xf32> to vector<1x8x16x4xf32>
    %26 = vector.shape_cast %25 : vector<1x8x16x4xf32> to vector<128x4xf32>
    %27 = vector.extract_strided_slice %22 {offsets = [0, 0, 2, 0], sizes = [1, 8, 16, 4], strides = [1, 1, 1, 1]} : vector<1x8x18x4xf32> to vector<1x8x16x4xf32>
    %28 = vector.shape_cast %27 : vector<1x8x16x4xf32> to vector<128x4xf32>
    %29 = tpu.concatenate %6, %8, %10, %15, %17, %19, %24, %26, %28 in 1 : vector<128x4xf32>, vector<128x4xf32>, vector<128x4xf32>, vector<128x4xf32>, vector<128x4xf32>, vector<128x4xf32>, vector<128x4xf32>, vector<128x4xf32>, vector<128x4xf32> -> vector<128x36xf32>
    %c0_8 = arith.constant 0 : index
    %c0_9 = arith.constant 0 : index
    %30 = vector.load %arg3[%c0_8, %c0_9] : memref<36x8xf32, #tpu.memory_space<vmem>>, vector<36x8xf32>
    %cst = arith.constant dense<0.000000e+00> : vector<128x8xf32>
    %31 = tpu.matmul %29, %30, %cst {dimension_numbers = #tpu.dot_dimension_numbers<[1], [0], [0], [1], [0, 0, 1, 1], [], []>} : vector<128x36xf32>, vector<36x8xf32>, vector<128x8xf32> -> vector<128x8xf32>
    %c0_10 = arith.constant 0 : index
    %c0_11 = arith.constant 0 : index
    %32 = vector.load %arg4[%c0_10, %c0_11] : memref<1x8xf32, #tpu.memory_space<vmem>>, vector<1x8xf32>
    %33 = vector.broadcast %32 : vector<1x8xf32> to vector<128x8xf32>
    %34 = arith.mulf %31, %33 : vector<128x8xf32>
    %c0_12 = arith.constant 0 : index
    %c0_13 = arith.constant 0 : index
    %35 = vector.load %arg5[%c0_12, %c0_13] : memref<1x8xf32, #tpu.memory_space<vmem>>, vector<1x8xf32>
    %36 = vector.broadcast %35 : vector<1x8xf32> to vector<128x8xf32>
    %37 = arith.addf %34, %36 : vector<128x8xf32>
    %cst_14 = arith.constant 0.000000e+00 : f32
    %38 = vector.broadcast %cst_14 : f32 to vector<128x8xf32>
    %39 = arith.cmpf ogt, %37, %38 : vector<128x8xf32>
    %cst_15 = arith.constant 1.000000e-01 : f32
    %40 = vector.broadcast %cst_15 : f32 to vector<128x8xf32>
    %41 = arith.mulf %40, %37 : vector<128x8xf32>
    %42 = arith.select %39, %37, %41 : vector<128x8xi1>, vector<128x8xf32>
    %43 = vector.shape_cast %42 : vector<128x8xf32> to vector<1x8x16x8xf32>
    %c0_16 = arith.constant 0 : index
    %c0_17 = arith.constant 0 : index
    %c0_18 = arith.constant 0 : index
    %c0_19 = arith.constant 0 : index
    %44 = vector.load %arg6[%c0_16, %c0_17, %c0_18, %c0_19] : memref<1x8x16x8xf32, #tpu.memory_space<vmem>>, vector<1x8x16x8xf32>
    tpu.vector_store %arg6[%c0_16, %c0_17, %c0_18, %c0_19], %43 {strides = array<i32>} : memref<1x8x16x8xf32, #tpu.memory_space<vmem>>, vector<1x8x16x8xf32>,
    return
  }
  func.func @transform_0(%arg0: i32, %arg1: i32) -> (i32, i32, i32, i32) {
    %c0_i32 = arith.constant 0 : i32
    %c0_i32_0 = arith.constant 0 : i32
    %c0_i32_1 = arith.constant 0 : i32
    %c0_i32_2 = arith.constant 0 : i32
    return %arg0, %c0_i32, %c0_i32_0, %c0_i32_1 : i32, i32, i32, i32
  }
  func.func @transform_1(%arg0: i32, %arg1: i32) -> (i32, i32) {
    %c0_i32 = arith.constant 0 : i32
    %c0_i32_0 = arith.constant 0 : i32
    %c0_i32_1 = arith.constant 0 : i32
    return %c0_i32, %c0_i32_0 : i32, i32
  }
  func.func @transform_2(%arg0: i32, %arg1: i32) -> (i32, i32) {
    %c0_i32 = arith.constant 0 : i32
    %c0_i32_0 = arith.constant 0 : i32
    %c0_i32_1 = arith.constant 0 : i32
    return %c0_i32, %c0_i32_0 : i32, i32
  }
  func.func @transform_3(%arg0: i32, %arg1: i32) -> (i32, i32) {
    %c0_i32 = arith.constant 0 : i32
    %c0_i32_0 = arith.constant 0 : i32
    %c0_i32_1 = arith.constant 0 : i32
    return %c0_i32, %c0_i32_0 : i32, i32
  }
  func.func @transform_4(%arg0: i32, %arg1: i32) -> (i32, i32, i32, i32) {
    %c0_i32 = arith.constant 0 : i32
    %c0_i32_0 = arith.constant 0 : i32
    %c0_i32_1 = arith.constant 0 : i32
    return %arg0, %arg1, %c0_i32, %c0_i32_0 : i32, i32, i32, i32
  }
}

</mosaic_0001>

<bundles_post_ra>
// kernel: tpu_custom_call.1
= control target key start
LH: loop header
LB: loop body
LE: loop exit
PB: predicated region body
PF: predicated region fallthrough
CT: control target
= control target key end

     0   :  { %s1827_s15 = smov 0   ;;  %s1829_s16 = smov 0   ;;  %s2721_s0 = inlined_call_operand.vmem [shape: f32[2,18,18,4], index: 0, kind: input, shape index: {}]   ;;  %s2722_s1 = inlined_call_operand.vmem [shape: f32[36,8], index: 1, kind: input, shape index: {}]   ;;  %s2723_s2 = inlined_call_operand.vmem [shape: f32[1,8], index: 2, kind: input, shape index: {}]   ;;  %s2724_s3 = inlined_call_operand.vmem [shape: f32[1,8], index: 3, kind: input, shape index: {}]   ;;  %s2725_s4 = inlined_call_operand.vmem [shape: f32[2,16,16,8], index: 4, kind: output, shape index: {}]  }
   0x1   :  { %s1831_s17 = smov 0   ;;  %s1833_s18 = smov 0  }
   0x2   :  { %s1835_s19 = smov 0  }
   0x3 LB: > { %s23_s20 = sadd.s32 1, %s1784_s17  ;;  %s26_s21 = sadd.s32 1, %s1788_s18  ;;  %s1792_s19 = sphi %s1835_s19, %s14_s19   ;;  %s1788_s18 = sphi %s1833_s18, %s2741_s18   ;;  %s1784_s17 = sphi %s1831_s17, %s2740_s17   ;;  %s1780_s16 = sphi %s1829_s16, %s2739_s16   ;;  %s1776_s15 = sphi %s1827_s15, %s2738_s15  }
   0x4   : > { %p24_p0 = scmp.ge.s32.totalorder %s23_s20, 2  ;;  %p1555_p1 = scmp.ge.s32.totalorder %s1792_s19, 1 }
   0x5   : > { %p176_p2 = scmp.lt.s32.totalorder %s1792_s19, 5 }
   0x6   : > { %s2743_s20 = smov (%p24_p0, %s23_s20), 0  ;;  %s2745_s21 = smov (!%p24_p0, %s26_s21), %s1788_s18 }
   0x7   : > { %p177_p3 = pnand %p1555_p1, %p176_p2  ;;  %p28_p4 = scmp.ge.s32.totalorder %s2745_s21, 2 }
   0x9   : > { %s2747_s21 = smov (%p28_p4, %s2745_s21), 0  ;;  %180 = sbr.rel (%p177_p3) target bundleno = 617 (0x269), region = 36 }
  0x10   : > { %p207_p5 = scmp.lt.s32.totalorder %s1780_s16, 1  ;;  %s1562_s22 = smul.u32 192, %s1776_s15  ;;  %vm274_vm0 = vcmask 1046528   ;;  %vm315_vm1 = vcmask 1045504   ;;  %vm1192_vm2 = vcmask 1043456   ;;  %vm1002_vm3 = vcmask 31744  }
  0x11   : > { %s1794_s28 = smov 4   ;;  %s1795_s29 = smov 8   ;;  %vm1019_vm4 = vcmask 64512   ;;  %vm1036_vm5 = vcmask 97280   ;;  %vm1053_vm6 = vcmask 130048   ;;  %vm1070_vm7 = vcmask 162816  }
  0x12   : > { %s2749_s16 = smov (!%p207_p5, %s1780_s16), 1  ;;  %s1796_s30 = smov 12   ;;  %vm1087_vm8 = vcmask 195584   ;;  %vm1104_vm9 = vcmask 228352   ;;  %vm1121_vm10 = vcmask 261120   ;;  %vm1143_vm11 = vcmask 293888  }
  0x13   : > { %s1705_s23 = smul.u32 432, %s2749_s16  ;;  %s1797_s5 = smov 16  }
  0x14   : > { %s1798_s6 = smov 20   ;;  %s1799_s7 = smov 24  }
  0x15   : > { %s211_s26 = scalar_lea.vmem %s2721_s0, %s1705_s23  ;;  %s1800_s8 = smov 28  }
  0x16   : > { %s1866_s27 = scalar_lea.vmem %s211_s26, %s1562_s22  ;;  %s1801_s24 = smov 32  }
  0x17   : > { %v1869_v0 = vld [vmem:[%s1866_s27 + $0x8] sm:$0xff]  ;;  %v228_v1 = vld [vmem:[%s1866_s27 + $0x10] sm:$0x3]  ;;  %v1873_v2 = vld [vmem:[%s1866_s27] sm:$0xff] }
  0x18   : > { %v276_v3 = vrot.slane %v1869_v0, 1  ;;  %v278_v4 = vrot.slane %v228_v1, 1  ;;  %v275_v5 = vrot.slane %v1873_v2, 1  ;;  %v1878_v6 = vld [vmem:[%s1866_s27 + $0x68] sm:$0xff]  ;;  %v240_v7 = vld [vmem:[%s1866_s27 + $0x70] sm:$0x3] }
  0x19   : > { %v1882_v8 = vrot.slane %v1878_v6, 1  ;;  %v298_v9 = vrot.slane %v240_v7, 1  ;;  %v1885_v10 = vld [vmem:[%s1866_s27 + $0x60] sm:$0xff]  ;;  %v1893_v14 = vrot.slane %v1878_v6, 2  ;;  %v316_v15 = vrot.slane %v1873_v2, 2  ;;  %v1921_v26 = vld [vmem:[%s1866_s27 + $0x78] sm:$0xff] }
  0x1a   : > { %v279_v11 = vsel %vm274_vm0, %v276_v3, %v278_v4  ;;  %v277_v12 = vsel %vm274_vm0, %v275_v5, %v276_v3  ;;  %v295_v13 = vrot.slane %v1885_v10, 1  ;;  %v336_v18 = vrot.slane %v1885_v10, 2  ;;  %v1924_v27 = vld [vmem:[%s1866_s27 + $0x18] sm:$0xff]  ;;  %v1927_v28 = vld [vmem:[%s1866_s27 + $0x80] sm:$0xff]  ;;  %v1579_v36 = vld [vmem:[%s1866_s27 + $0x88] sm:$0x3] }
  0x1b   : > { %620 = vrot.lane.b32.xlu1 %v279_v11, %s1794_s28  ;;  %618 = vrot.lane.b32.xlu0 %v277_v12, %s1794_s28  ;;  %v299_v16 = vsel %vm274_vm0, %v1882_v8, %v298_v9  ;;  %v317_v19 = vrot.slane %v1869_v0, 2  ;;  %v339_v22 = vrot.slane %v240_v7, 2  ;;  %v319_v23 = vrot.slane %v228_v1, 2  ;;  %v1930_v29 = vld [vmem:[%s1866_s27 + $0x20] sm:$0xff]  ;;  %v1567_v37 = vld [vmem:[%s1866_s27 + $0x28] sm:$0x3] }
  0x1c   : > { %v1900_v17 = vsel %vm274_vm0, %v295_v13, %v1882_v8  ;;  %v1909_v20 = vsel %vm315_vm1, %v336_v18, %v1893_v14  ;;  %v427_v30 = vrot.slane %v1921_v26, 1  ;;  %v407_v31 = vrot.slane %v1924_v27, 1  ;;  %v243_v46 = vld [vmem:[%s1866_s27 + $0x88] sm:$0x3]  ;;  %v1977_v58 = vld [vmem:[%s1866_s27 + $0x90] sm:$0xff]  ;;  %v1991_v1 = vld [vmem:[%s1866_s27 + $0x98] sm:$0xff] }
  0x1d   : > { %v318_v21 = vsel %vm315_vm1, %v316_v15, %v317_v19  ;;  %v340_v24 = vsel %vm315_vm1, %v1893_v14, %v339_v22  ;;  %v320_v25 = vsel %vm315_vm1, %v317_v19, %v319_v23  ;;  %v428_v32 = vrot.slane %v1927_v28, 1  ;;  %v231_v47 = vld [vmem:[%s1866_s27 + $0x28] sm:$0x3]  ;;  %v1980_v59 = vld [vmem:[%s1866_s27 + $0x30] sm:$0xff]  ;;  %v1994_v3 = vld [vmem:[%s1866_s27 + $0x38] sm:$0xff] }
  0x1e   : > { %v408_v33 = vrot.slane %v1930_v29, 1  ;;  %v430_v38 = vrot.slane %v1579_v36, 1  ;;  %v410_v39 = vrot.slane %v1567_v37, 1  ;;  %v467_v40 = vrot.slane %v1921_v26, 2  ;;  %v1605_v13 = vld [vmem:[%s1866_s27 + $0xa0] sm:$0x3] }
  0x1f   : > { %636 = vrot.lane.b32.xlu1 %v299_v16, %s1794_s28  ;;  %634 = vrot.lane.b32.xlu0 %v1900_v17, %s1794_s28  ;;  %v429_v34 = vsel %vm274_vm0, %v427_v30, %v428_v32  ;;  %v447_v41 = vrot.slane %v1924_v27, 2  ;;  %v468_v42 = vrot.slane %v1927_v28, 2  ;;  %v448_v43 = vrot.slane %v1930_v29, 2  ;;  %v1593_v15 = vld [vmem:[%s1866_s27 + $0x40] sm:$0x3] }
  0x20   : > { %v409_v35 = vsel %vm274_vm0, %v407_v31, %v408_v33  ;;  %v431_v44 = vsel %vm274_vm0, %v428_v32, %v430_v38  ;;  %v411_v45 = vsel %vm274_vm0, %v408_v33, %v410_v39  ;;  %v303_v50 = vrot.slane %v243_v46, 1  ;;  %v1138_v23 = vld [vmem:[%s2722_s1] sm:$0xff] }
  0x21   : > { %v469_v48 = vsel %vm315_vm1, %v467_v40, %v468_v42  ;;  %v449_v49 = vsel %vm315_vm1, %v447_v41, %v448_v43  ;;  %v283_v51 = vrot.slane %v231_v47, 1  ;;  %v470_v54 = vrot.slane %v1579_v36, 2  ;;  %v1582_v38 = vld [vmem:[%s1866_s27 + $0xa0] sm:$0x3] }
  0x22   : > { %v304_v52 = vsel %vm274_vm0, %v428_v32, %v303_v50  ;;  %v450_v55 = vrot.slane %v1567_v37, 2  ;;  %v344_v60 = vrot.slane %v243_v46, 2  ;;  %v324_v61 = vrot.slane %v231_v47, 2  ;;  %v1570_v39 = vld [vmem:[%s1866_s27 + $0x40] sm:$0x3] }
  0x23   : > { %682 = vrot.lane.b32.xlu1 %v1909_v20, %s1795_s29  ;;  %666 = vrot.lane.b32.xlu0 %v318_v21, %s1795_s29  ;;  %v284_v53 = vsel %vm274_vm0, %v408_v33, %v283_v51  ;;  %v471_v56 = vsel %vm315_vm1, %v468_v42, %v470_v54  ;;  %v558_v4 = vrot.slane %v1977_v58, 1  ;;  %v538_v5 = vrot.slane %v1980_v59, 1  ;;  %v1140_v33 = vld [vmem:[%s2722_s1 + $0x10] sm:$0xff]  ;;  %v246_v47 = vld [vmem:[%s1866_s27 + $0xa0] sm:$0x3] }
  0x24   : > { %v451_v57 = vsel %vm315_vm1, %v448_v43, %v450_v55  ;;  %v345_v62 = vsel %vm315_vm1, %v468_v42, %v344_v60  ;;  %v325_v63 = vsel %vm315_vm1, %v448_v43, %v324_v61  ;;  %v2003_v7 = vrot.slane %v1991_v1, 1  ;;  %v1142_v42 = vld [vmem:[%s2722_s1 + $0x20] sm:$0xf]  ;;  %v2096_v61 = vld [vmem:[%s1866_s27 + $0xa8] sm:$0xff] }
  0x25   : > { %v2006_v9 = vrot.slane %v1994_v3, 1  ;;  %v561_v16 = vrot.slane %v1605_v13, 1  ;;  %v541_v18 = vrot.slane %v1593_v15, 1  ;;  %v598_v19 = vrot.slane %v1977_v58, 2  ;;  %2730 = vst [vmem:[#allocation2_spill] sm:$0xff] %v2096_v61 }
  0x26   : > { %v560_v11 = vsel %vm274_vm0, %v558_v4, %v2003_v7  ;;  %v578_v21 = vrot.slane %v1980_v59, 2  ;;  %v2027_v22 = vrot.slane %v1991_v1, 2  ;;  %v435_v40 = vrot.slane %v1582_v38, 1 }
  0x27   : > { %684 = vrot.lane.b32.xlu1 %v340_v24, %s1795_s29  ;;  %668 = vrot.lane.b32.xlu0 %v320_v25, %s1795_s29  ;;  %v540_v12 = vsel %vm274_vm0, %v538_v5, %v2006_v9  ;;  %v1139_v24 = vld [vmem:[%s2722_s1 + $0x8] sm:$0xff]  ;;  %v2038_v25 = vrot.slane %v1994_v3, 2  ;;  %v562_v30 = vsel %vm274_vm0, %v2003_v7, %v561_v16  ;;  %v542_v31 = vsel %vm274_vm0, %v2006_v9, %v541_v18  ;;  %v2124_v18 = vld [vmem:[%s1866_s27 + $0xb0] sm:$0xff] }
  0x28   : > { %v1691_v32 = vpack.c.bf16 %v1139_v24, %v1138_v23  ;;  %v415_v41 = vrot.slane %v1570_v39, 1  ;;  %v436_v43 = vsel %vm274_vm0, %v2003_v7, %v435_v40  ;;  %v581_v46 = vrot.slane %v1593_v15, 2  ;;  %2732 = vst [vmem:[#allocation4_spill] sm:$0xff] %v2124_v18 }
  0x29   : > { %v580_v36 = vsel %vm315_vm1, %v578_v21, %v2038_v25  ;;  %v308_v51 = vrot.slane %v246_v47, 1  ;;  %v475_v55 = vrot.slane %v1582_v38, 2  ;;  %v563_v21 = vrot.slane %v2096_v61, 1  ;;  %v1596_v38 = vld [vmem:[%s1866_s27 + $0x58] sm:$0x3] }
  0x2a   : > { %1692 = vmatprep.subr.bf16.mxu0 %v1691_v32  ;;  %1699 = vmatprep.subr.bf16.mxu1 %v1691_v32  ;;  %v582_v50 = vsel %vm315_vm1, %v2038_v25, %v581_v46  ;;  %v2136_v23 = vrot.slane %v2124_v18, 1  ;;  %v546_v40 = vrot.slane %v1596_v38, 1 }
  0x2b   : > { %730 = vrot.lane.b32.xlu1 %v1921_v26, %s1796_s30  ;;  %714 = vrot.lane.b32.xlu0 %v1924_v27, %s1796_s30 }
  0x2c   : > { %1694 = vmatpush3.bf16.msra.mxu0 %v1691_v32  ;;  %1702 = vmatpush3.bf16.msra.mxu1 %v1691_v32 }
  0x2f   : > { %732 = vrot.lane.b32.xlu1 %v1927_v28, %s1796_s30  ;;  %716 = vrot.lane.b32.xlu0 %v1930_v29, %s1796_s30 }
  0x33   : > { %778 = vrot.lane.b32.xlu1 %v429_v34, %s1797_s5  ;;  %762 = vrot.lane.b32.xlu0 %v409_v35, %s1797_s5 }
  0x37   : > { %638 = vrot.lane.b32.xlu1 %v429_v34, %s1794_s28  ;;  %622 = vrot.lane.b32.xlu0 %v409_v35, %s1794_s28  ;;  %v1141_v34 = vld [vmem:[%s2722_s1 + $0x18] sm:$0xff]  ;;  %v600_v35 = vsel %vm315_vm1, %v598_v19, %v2027_v22  ;;  %v2127_v19 = vld [vmem:[%s1866_s27 + $0x50] sm:$0xff] }
  0x38   : > { %v1695_v37 = vpack.c.bf16 %v1141_v34, %v1140_v33  ;;  %2733 = vst [vmem:[#allocation5_spill] sm:$0xff] %v2127_v19  ;;  %v2139_v24 = vrot.slane %v2127_v19, 1  ;;  %v2181_v46 = vrot.slane %v2127_v19, 2 }
  0x3a   : > { %1696 = vmatprep.subr.bf16.mxu0 %v1695_v37  ;;  %1700 = vmatprep.subr.bf16.mxu1 %v1695_v37 }
  0x3b   : > { %780 = vrot.lane.b32.xlu1 %v431_v44, %s1797_s5  ;;  %764 = vrot.lane.b32.xlu0 %v411_v45, %s1797_s5  ;;  %v416_v44 = vsel %vm274_vm0, %v2006_v9, %v415_v41  ;;  %v601_v45 = vrot.slane %v1605_v13, 2 }
  0x3c   : > { %1698 = vmatpush3.bf16.msra.mxu0 %v1695_v37  ;;  %1703 = vmatpush3.bf16.msra.mxu1 %v1695_v37  ;;  %v1608_v37 = vld [vmem:[%s1866_s27 + $0xb8] sm:$0x3] }
  0x3d   : > { %1665 = vmatprep.subr.msk.mxu0 %vm1192_vm2, %v1142_v42  ;;  %1701 = vmatprep.subr.msk.mxu1 %vm1192_vm2, %v1142_v42 }
  0x3f   : > { %826 = vrot.lane.b32.xlu1 %v469_v48, %s1798_s6  ;;  %810 = vrot.lane.b32.xlu0 %v449_v49, %s1798_s6 }
  0x40   : > { %1666 = vmatpush3.msk.msra.mxu0 %vm1192_vm2, %v1142_v42  ;;  %1704 = vmatpush3.msk.msra.mxu1 %vm1192_vm2, %v1142_v42 }
  0x43   : > { %640 = vrot.lane.b32.xlu1 %v304_v52, %s1794_s28  ;;  %624 = vrot.lane.b32.xlu0 %v284_v53, %s1794_s28  ;;  %v309_v53 = vsel %vm274_vm0, %v2003_v7, %v308_v51 }
  0x47   : > { %686 = vrot.lane.b32.xlu1 %v469_v48, %s1795_s29  ;;  %670 = vrot.lane.b32.xlu0 %v449_v49, %s1795_s29  ;;  %v234_v48 = vld [vmem:[%s1866_s27 + $0x40] sm:$0x3]  ;;  %v602_v49 = vsel %vm315_vm1, %v2027_v22, %v601_v45  ;;  %v2178_v45 = vrot.slane %v2124_v18, 2 }
  0x48   : > { %v288_v52 = vrot.slane %v234_v48, 1  ;;  %v329_v4 = vrot.slane %v234_v48, 2  ;;  %v547_v48 = vsel %vm274_vm0, %v2139_v24, %v546_v40  ;;  %v586_v40 = vrot.slane %v1596_v38, 2 }
  0x4a   : > { %v289_v54 = vsel %vm274_vm0, %v2006_v9, %v288_v52 }
  0x4b   : > { %828 = vrot.lane.b32.xlu1 %v471_v56, %s1798_s6  ;;  %812 = vrot.lane.b32.xlu0 %v451_v57, %s1798_s6  ;;  %v455_v56 = vrot.slane %v1570_v39, 2  ;;  %v476_v57 = vsel %vm315_vm1, %v2027_v22, %v475_v55  ;;  %v566_v39 = vrot.slane %v1608_v37, 1  ;;  %v1585_v55 = vld [vmem:[%s1866_s27 + $0xb8] sm:$0x3] }
  0x4d   : > { %v456_v60 = vsel %vm315_vm1, %v2038_v25, %v455_v56  ;;  %v1573_v56 = vld [vmem:[%s1866_s27 + $0x58] sm:$0x3] }
  0x4f   : > { %874 = vrot.lane.b32.xlu1 %v1977_v58, %s1799_s7  ;;  %858 = vrot.lane.b32.xlu0 %v1980_v59, %s1799_s7 }
  0x53   : > { %688 = vrot.lane.b32.xlu1 %v345_v62, %s1795_s29  ;;  %672 = vrot.lane.b32.xlu0 %v325_v63, %s1795_s29  ;;  %v2099_v62 = vld [vmem:[%s1866_s27 + $0x48] sm:$0xff]  ;;  %v349_v63 = vrot.slane %v246_v47, 2  ;;  %v567_v47 = vsel %vm274_vm0, %v2136_v23, %v566_v39  ;;  %v606_v39 = vrot.slane %v1608_v37, 2 }
  0x54   : > { %2731 = vst [vmem:[#allocation3_spill] sm:$0xff] %v2099_v62 }
  0x55   : > { %v350_v9 = vsel %vm315_vm1, %v2027_v22, %v349_v63  ;;  %v543_v22 = vrot.slane %v2099_v62, 1 }
  0x57   : > { %734 = vrot.lane.b32.xlu1 %v1977_v58, %s1796_s30  ;;  %718 = vrot.lane.b32.xlu0 %v1980_v59, %s1796_s30  ;;  %v545_v32 = vsel %vm274_vm0, %v543_v22, %v2139_v24 }
  0x5b   : > { %876 = vrot.lane.b32.xlu1 %v1991_v1, %s1799_s7  ;;  %860 = vrot.lane.b32.xlu0 %v1994_v3, %s1799_s7 }
  0x5f   : > { %922 = vrot.lane.b32.xlu1 %v560_v11, %s1800_s8  ;;  %906 = vrot.lane.b32.xlu0 %v540_v12, %s1800_s8 }
  0x63   : > { %736 = vrot.lane.b32.xlu1 %v1991_v1, %s1796_s30  ;;  %720 = vrot.lane.b32.xlu0 %v1994_v3, %s1796_s30 }
  0x67   : > { %782 = vrot.lane.b32.xlu1 %v560_v11, %s1797_s5  ;;  %766 = vrot.lane.b32.xlu0 %v540_v12, %s1797_s5 }
  0x6b   : > { %924 = vrot.lane.b32.xlu1 %v562_v30, %s1800_s8  ;;  %908 = vrot.lane.b32.xlu0 %v542_v31, %s1800_s8  ;;  %v565_v31 = vsel %vm274_vm0, %v563_v21, %v2136_v23 }
  0x6f   : > { %970 = vrot.lane.b32.xlu1 %v600_v35, %s1801_s24  ;;  %954 = vrot.lane.b32.xlu0 %v580_v36, %s1801_s24 }
  0x73   : > { %642 = vrot.lane.b32.xlu1 %v560_v11, %s1794_s28  ;;  %626 = vrot.lane.b32.xlu0 %v540_v12, %s1794_s28  ;;  %v330_v11 = vsel %vm315_vm1, %v2038_v25, %v329_v4 }
  0x77   : > { %784 = vrot.lane.b32.xlu1 %v436_v43, %s1797_s5  ;;  %768 = vrot.lane.b32.xlu0 %v416_v44, %s1797_s5  ;;  %v603_v43 = vrot.slane %v2096_v61, 2  ;;  %v583_v44 = vrot.slane %v2099_v62, 2 }
  0x79   : > { %v605_v51 = vsel %vm315_vm1, %v603_v43, %v2178_v45  ;;  %v585_v52 = vsel %vm315_vm1, %v583_v44, %v2181_v46  ;;  %v249_v44 = vld [vmem:[%s1866_s27 + $0xb8] sm:$0x3] }
  0x7b   : > { %830 = vrot.lane.b32.xlu1 %v600_v35, %s1798_s6  ;;  %814 = vrot.lane.b32.xlu0 %v580_v36, %s1798_s6 }
  0x7f   : > { %972 = vrot.lane.b32.xlu1 %v602_v49, %s1801_s24  ;;  %956 = vrot.lane.b32.xlu0 %v582_v50, %s1801_s24 }
  0x83   : > { %644 = vrot.lane.b32.xlu1 %v309_v53, %s1794_s28  ;;  %628 = vrot.lane.b32.xlu0 %v289_v54, %s1794_s28 }
  0x87   : > { %690 = vrot.lane.b32.xlu1 %v600_v35, %s1795_s29  ;;  %674 = vrot.lane.b32.xlu0 %v580_v36, %s1795_s29 }
  0x8b   : > { %832 = vrot.lane.b32.xlu1 %v476_v57, %s1798_s6  ;;  %816 = vrot.lane.b32.xlu0 %v456_v60, %s1798_s6  ;;  %v440_v57 = vrot.slane %v1585_v55, 1  ;;  %v420_v60 = vrot.slane %v1573_v56, 1 }
  0x8d   : > { %v2101_v5 = vpop.permute.xlu1 %620  ;;  %v2103_v7 = vpop.permute.xlu0 %618 }
  0x8f   : > { %878 = vrot.lane.b32.xlu1 %v2096_v61, %s1799_s7  ;;  %862 = vrot.lane.b32.xlu0 %v2099_v62, %s1799_s7 }
  0x91   : > { %v2113_v12 = vpop.permute.xlu1 %636  ;;  %v2115_v13 = vpop.permute.xlu0 %634 }
  0x93   : > { %692 = vrot.lane.b32.xlu1 %v350_v9, %s1795_s29  ;;  %676 = vrot.lane.b32.xlu0 %v330_v11, %s1795_s29  ;;  %v441_v9 = vsel %vm274_vm0, %v2136_v23, %v440_v57  ;;  %v421_v11 = vsel %vm274_vm0, %v2139_v24, %v420_v60  ;;  %v313_v57 = vrot.slane %v249_v44, 1 }
  0x95   : > { %v2119_v15 = vpop.permute.xlu1 %682  ;;  %v2121_v16 = vpop.permute.xlu0 %666  ;;  %v314_v38 = vsel %vm274_vm0, %v2136_v23, %v313_v57 }
  0x97   : > { %738 = vrot.lane.b32.xlu1 %v2096_v61, %s1796_s30  ;;  %722 = vrot.lane.b32.xlu0 %v2099_v62, %s1796_s30 }
  0x99   : > { %v2141_v25 = vpop.permute.xlu1 %684  ;;  %v2143_v30 = vpop.permute.xlu0 %668 }
  0x9b   : > { %880 = vrot.lane.b32.xlu1 %v2124_v18, %s1799_s7  ;;  %864 = vrot.lane.b32.xlu0 %v2127_v19, %s1799_s7 }
  0x9d   : > { %v2153_v33 = vpop.permute.xlu1 %730  ;;  %v2155_v34 = vpop.permute.xlu0 %714 }
  0x9f   : > { %926 = vrot.lane.b32.xlu1 %v565_v31, %s1800_s8  ;;  %910 = vrot.lane.b32.xlu0 %v545_v32, %s1800_s8 }
  0xa1   : > { %v2159_v35 = vpop.permute.xlu1 %732  ;;  %v2161_v36 = vpop.permute.xlu0 %716 }
  0xa3   : > { %740 = vrot.lane.b32.xlu1 %v2124_v18, %s1796_s30  ;;  %724 = vrot.lane.b32.xlu0 %v2127_v19, %s1796_s30  ;;  %v480_v19 = vrot.slane %v1585_v55, 2  ;;  %v460_v18 = vrot.slane %v1573_v56, 2  ;;  %v2258_v55 = vld [vmem:[%s1866_s27 + $0xc0] sm:$0xff]  ;;  %v354_v56 = vrot.slane %v249_v44, 2 }
  0xa5   : > { %v2169_v41 = vpop.permute.xlu1 %778  ;;  %v2171_v42 = vpop.permute.xlu0 %762  ;;  %v481_v23 = vsel %vm315_vm1, %v2178_v45, %v480_v19 }
  0xa7   : > { %786 = vrot.lane.b32.xlu1 %v565_v31, %s1797_s5  ;;  %770 = vrot.lane.b32.xlu0 %v545_v32, %s1797_s5 }
  0xa9   : > { %v2187_v49 = vpop.permute.xlu1 %638  ;;  %v2189_v50 = vpop.permute.xlu0 %622 }
  0xab   : > { %928 = vrot.lane.b32.xlu1 %v567_v47, %s1800_s8  ;;  %912 = vrot.lane.b32.xlu0 %v547_v48, %s1800_s8  ;;  %v607_v47 = vsel %vm315_vm1, %v2178_v45, %v606_v39  ;;  %v587_v48 = vsel %vm315_vm1, %v2181_v46, %v586_v40 }
  0xad   : > { %v2197_v53 = vpop.permute.xlu1 %780  ;;  %v2199_v54 = vpop.permute.xlu0 %764 }
  0xaf   : > { %974 = vrot.lane.b32.xlu1 %v605_v51, %s1801_s24  ;;  %958 = vrot.lane.b32.xlu0 %v585_v52, %s1801_s24 }
  0xb1   : > { %v2205_v63 = vpop.permute.xlu1 %826  ;;  %v2207_v4 = vpop.permute.xlu0 %810 }
  0xb3   : > { %646 = vrot.lane.b32.xlu1 %v565_v31, %s1794_s28  ;;  %630 = vrot.lane.b32.xlu0 %v545_v32, %s1794_s28  ;;  %v237_v32 = vld [vmem:[%s1866_s27 + $0x58] sm:$0x3] }
  0xb4   : > { %v293_v60 = vrot.slane %v237_v32, 1 }
  0xb5   : > { %v2215_v21 = vpop.permute.xlu1 %640  ;;  %v2217_v22 = vpop.permute.xlu0 %624 }
  0xb7   : > { %788 = vrot.lane.b32.xlu1 %v441_v9, %s1797_s5  ;;  %772 = vrot.lane.b32.xlu0 %v421_v11, %s1797_s5  ;;  %v294_v11 = vsel %vm274_vm0, %v2139_v24, %v293_v60  ;;  %v461_v24 = vsel %vm315_vm1, %v2181_v46, %v460_v18  ;;  %v355_v18 = vsel %vm315_vm1, %v2178_v45, %v354_v56 }
  0xb8   : > { %v1013_v45 = vsel %vm1002_vm3, %v1921_v26, %v2187_v49 }
  0xb9   : > { %v687_v43 = vpop.permute.xlu1 %686  ;;  %v671_v31 = vpop.permute.xlu0 %670 }
  0xba   : > { %v1030_v56 = vsel %vm1019_vm4, %v1013_v45, %v687_v43  ;;  %v1003_v43 = vsel %vm1002_vm3, %v1873_v2, %v2103_v7 }
  0xbb   : > { %834 = vrot.lane.b32.xlu1 %v605_v51, %s1798_s6  ;;  %818 = vrot.lane.b32.xlu0 %v585_v52, %s1798_s6 }
  0xbd   : > { %v2229_v9 = vpop.permute.xlu1 %828  ;;  %v2231_v37 = vpop.permute.xlu0 %812 }
  0xbf   : > { %976 = vrot.lane.b32.xlu1 %v607_v47, %s1801_s24  ;;  %960 = vrot.lane.b32.xlu0 %v587_v48, %s1801_s24 }
  0xc1   : > { %v2239_v39 = vpop.permute.xlu1 %874  ;;  %v2241_v40 = vpop.permute.xlu0 %858 }
  0xc3   : > { %648 = vrot.lane.b32.xlu1 %v314_v38, %s1794_s28  ;;  %632 = vrot.lane.b32.xlu0 %v294_v11, %s1794_s28  ;;  %v334_v38 = vrot.slane %v237_v32, 2 }
  0xc5   : > { %v2245_v47 = vpop.permute.xlu1 %688  ;;  %v2247_v48 = vpop.permute.xlu0 %672  ;;  %v335_v19 = vsel %vm315_vm1, %v2181_v46, %v334_v38  ;;  %v1005_v46 = vsel %vm1002_vm3, %v1924_v27, %v2189_v50 }
  0xc6   : > { %v1022_v38 = vsel %vm1019_vm4, %v1005_v46, %v671_v31  ;;  %v1011_v31 = vsel %vm1002_vm3, %v1885_v10, %v2115_v13 }
  0xc7   : > { %694 = vrot.lane.b32.xlu1 %v605_v51, %s1795_s29  ;;  %678 = vrot.lane.b32.xlu0 %v585_v52, %s1795_s29 }
  0xc9   : > { %v735_v57 = vpop.permute.xlu1 %734  ;;  %v719_v60 = vpop.permute.xlu0 %718 }
  0xca   : > { %v1047_v26 = vsel %vm1036_vm5, %v1030_v56, %v735_v57  ;;  %v1039_v27 = vsel %vm1036_vm5, %v1022_v38, %v719_v60  ;;  %v1028_v57 = vsel %vm1019_vm4, %v1011_v31, %v2119_v15  ;;  %v1020_v60 = vsel %vm1019_vm4, %v1003_v43, %v2121_v16 }
  0xcb   : > { %836 = vrot.lane.b32.xlu1 %v481_v23, %s1798_s6  ;;  %820 = vrot.lane.b32.xlu0 %v461_v24, %s1798_s6  ;;  %v2279_v24 = vld [vmem:[%s1866_s27 + $0xc8] sm:$0xff]  ;;  %v1045_v7 = vsel %vm1036_vm5, %v1028_v57, %v2153_v33  ;;  %v608_v43 = vrot.slane %v2258_v55, 2 }
  0xcc   : > { %v1062_v15 = vsel %vm1053_vm6, %v1045_v7, %v2169_v41 }
  0xcd   : > { %v2260_v51 = vpop.permute.xlu1 %876  ;;  %v2262_v52 = vpop.permute.xlu0 %860  ;;  %v1079_v33 = vsel %vm1070_vm7, %v1062_v15, %v2205_v63 }
  0xce   : > { %v1096_v41 = vsel %vm1087_vm8, %v1079_v33, %v2239_v39 }
  0xcf   : > { %882 = vrot.lane.b32.xlu1 %v2258_v55, %s1799_s7  ;;  %866 = vrot.lane.b32.xlu0 %v1885_v10, %s1799_s7 }
  0xd1   : > { %v923_v11 = vpop.permute.xlu1 %922  ;;  %v907_v23 = vpop.permute.xlu0 %906 }
  0xd2   : > { %v1113_v46 = vsel %vm1104_vm9, %v1096_v41, %v923_v11 }
  0xd3   : > { %696 = vrot.lane.b32.xlu1 %v355_v18, %s1795_s29  ;;  %680 = vrot.lane.b32.xlu0 %v335_v19, %s1795_s29  ;;  %v568_v18 = vrot.slane %v2258_v55, 1  ;;  %v2295_v19 = vrot.slane %v2279_v24, 1  ;;  %s1559_s29 = sshll.u32 %s2749_s16, 5 }
  0xd5   : > { %v2274_v44 = vpop.permute.xlu1 %736  ;;  %v2276_v32 = vpop.permute.xlu0 %720  ;;  %v570_v2 = vsel %vm274_vm0, %v568_v18, %v2295_v19 }
  0xd7   : > { %742 = vrot.lane.b32.xlu1 %v2258_v55, %s1796_s30  ;;  %726 = vrot.lane.b32.xlu0 %v1885_v10, %s1796_s30  ;;  %v1037_v10 = vsel %vm1036_vm5, %v1020_v60, %v2155_v34  ;;  %v2379_v60 = vrot.slane %v2279_v24, 2  ;;  %v1588_v55 = vld [vmem:[%s1866_s27 + $0xd0] sm:$0x3] }
  0xd8   : > { %v1054_v16 = vsel %vm1053_vm6, %v1037_v10, %v2171_v42 }
  0xd9   : > { %v783_v49 = vpop.permute.xlu1 %782  ;;  %v767_v50 = vpop.permute.xlu0 %766  ;;  %v1071_v34 = vsel %vm1070_vm7, %v1054_v16, %v2207_v4  ;;  %v2347_v4 = vld [vmem:[%s1866_s27 + $0xd0] sm:$0x3]  ;;  %v610_v15 = vsel %vm315_vm1, %v608_v43, %v2379_v60  ;;  %v445_v16 = vrot.slane %v1588_v55, 1 }
  0xda   : > { %v2300_v62 = vsel %vm1053_vm6, %v1047_v26, %v783_v49  ;;  %v2303_v61 = vsel %vm1053_vm6, %v1039_v27, %v767_v50  ;;  %v1088_v42 = vsel %vm1087_vm8, %v1071_v34, %v2241_v40  ;;  %v2352_v27 = vld [vmem:[%s1866_s27 + $0x70] sm:$0x3]  ;;  %v571_v39 = vrot.slane %v2347_v4, 1 }
  0xdb   : > { %884 = vrot.lane.b32.xlu1 %v2279_v24, %s1799_s7  ;;  %868 = vrot.lane.b32.xlu0 %v1878_v6, %s1799_s7  ;;  %v1105_v63 = vsel %vm1104_vm9, %v1088_v42, %v907_v23  ;;  %v551_v23 = vrot.slane %v2352_v27, 1  ;;  %v1014_v49 = vsel %vm1002_vm3, %v1927_v28, %v2215_v21  ;;  %v1006_v50 = vsel %vm1002_vm3, %v1930_v29, %v2217_v22 }
  0xdc   : > { %v1031_v31 = vsel %vm1019_vm4, %v1014_v49, %v2245_v47  ;;  %v1023_v57 = vsel %vm1019_vm4, %v1006_v50, %v2247_v48  ;;  %v572_v28 = vsel %vm274_vm0, %v2295_v19, %v571_v39  ;;  %v1612_v49 = vld [vmem:[%s1866_s27 + $0xd8] sm:$0xff] }
  0xdd   : > { %v2325_v13 = vpop.permute.xlu1 %924  ;;  %v2327_v45 = vpop.permute.xlu0 %908  ;;  %v1048_v29 = vsel %vm1036_vm5, %v1031_v31, %v2274_v44  ;;  %v1040_v21 = vsel %vm1036_vm5, %v1023_v57, %v2276_v32  ;;  %v552_v48 = vsel %vm274_vm0, %v1882_v8, %v551_v23  ;;  %v1004_v44 = vsel %vm1002_vm3, %v1869_v0, %v2101_v5  ;;  %v1600_v31 = vld [vmem:[%s1866_s27 + $0x78] sm:$0xff]  ;;  %v1613_v57 = vld [vmem:[%s1866_s27 + $0xe0] sm:$0xff] }
  0xde   : > { %v1012_v32 = vsel %vm1002_vm3, %v1878_v6, %v2113_v12  ;;  %v1021_v10 = vsel %vm1019_vm4, %v1004_v44, %v2143_v30 }
  0xdf   : > { %930 = vrot.lane.b32.xlu1 %v570_v2, %s1800_s8  ;;  %914 = vrot.lane.b32.xlu0 %v1900_v17, %s1800_s8  ;;  %v1029_v7 = vsel %vm1019_vm4, %v1012_v32, %v2141_v25 }
  0xe0   : > { %v1046_v0 = vsel %vm1036_vm5, %v1029_v7, %v2159_v35  ;;  %v1602_v7 = vld [vmem:[%s1866_s27 + $0x88] sm:$0x3] }
  0xe1   : > { %v971_v56 = vpop.permute.xlu1 %970  ;;  %v955_v38 = vpop.permute.xlu0 %954  ;;  %v1063_v30 = vsel %vm1053_vm6, %v1046_v0, %v2197_v53  ;;  %v446_v53 = vsel %vm274_vm0, %v2295_v19, %v445_v16  ;;  %v611_v19 = vrot.slane %v2347_v4, 2  ;;  %v556_v0 = vrot.slane %v1602_v7, 1 }
  0xe2   : > { %v1130_v18 = vsel %vm1121_vm10, %v1113_v46, %v971_v56  ;;  %v1122_v26 = vsel %vm1121_vm10, %v1105_v63, %v955_v38  ;;  %v1080_v34 = vsel %vm1070_vm7, %v1063_v30, %v2229_v9  ;;  %v591_v63 = vrot.slane %v2352_v27, 2 }
  0xe3   : > { %744 = vrot.lane.b32.xlu1 %v2279_v24, %s1796_s30  ;;  %1679 = vmatprep.mubr.msk.f32.mxu1 %vm1143_vm11, %v1130_v18  ;;  %v485_v56 = vrot.slane %v1588_v55, 2  ;;  %v613_v30 = vrot.slane %v1612_v49, 2 }
  0xe4   : > { %728 = vrot.lane.b32.xlu0 %v1878_v6, %s1796_s30  ;;  %1667 = vmatprep.mubr.msk.f32.mxu0 %vm1143_vm11, %v1122_v26  ;;  %v1038_v6 = vsel %vm1036_vm5, %v1021_v10, %v2161_v36  ;;  %v1097_v36 = vsel %vm1087_vm8, %v1080_v34, %v2260_v51  ;;  %v592_v27 = vsel %vm315_vm1, %v1893_v14, %v591_v63 }
  0xe5   : > { %v2361_v40 = vpop.permute.xlu1 %642  ;;  %v2363_v11 = vpop.permute.xlu0 %626  ;;  %v1055_v33 = vsel %vm1053_vm6, %v1038_v6, %v2199_v54  ;;  %v1114_v54 = vsel %vm1104_vm9, %v1097_v36, %v2325_v13 }
  0xe6   : > { %v1072_v35 = vsel %vm1070_vm7, %v1055_v33, %v2231_v37  ;;  %v1015_v38 = vsel %vm1002_vm3, %v1977_v58, %v2361_v40  ;;  %v1007_v4 = vsel %vm1002_vm3, %v1980_v59, %v2363_v11  ;;  %v486_v58 = vsel %vm315_vm1, %v2379_v60, %v485_v56 }
  0xe7   : > { %790 = vrot.lane.b32.xlu1 %v570_v2, %s1797_s5  ;;  %v1576_v2 = vld [vmem:[%s1866_s27 + $0x70] sm:$0x3]  ;;  %v1089_v41 = vsel %vm1087_vm8, %v1072_v35, %v2262_v52  ;;  %v614_v33 = vrot.slane %v1613_v57, 2  ;;  %v593_v35 = vrot.slane %v1600_v31, 2 }
  0xe8   : > { %774 = vrot.lane.b32.xlu0 %v1900_v17, %s1797_s5  ;;  %v425_v25 = vrot.slane %v1576_v2, 1  ;;  %v1106_v9 = vsel %vm1104_vm9, %v1089_v41, %v2327_v45 }
  0xe9   : > { %v785_v22 = vpop.permute.xlu1 %784  ;;  %v769_v47 = vpop.permute.xlu0 %768 }
  0xea   : > { %v2393_v24 = vsel %vm1053_vm6, %v1048_v29, %v785_v22  ;;  %v2396_v17 = vsel %vm1053_vm6, %v1040_v21, %v769_v47  ;;  %v426_v51 = vsel %vm274_vm0, %v1882_v8, %v425_v25  ;;  %v612_v8 = vsel %vm315_vm1, %v2379_v60, %v611_v19  ;;  %v1601_v60 = vld [vmem:[%s1866_s27 + $0x80] sm:$0xff] }
  0xeb   : > { %932 = vrot.lane.b32.xlu1 %v572_v28, %s1800_s8  ;;  %v573_v28 = vrot.slane %v1612_v49, 1  ;;  %v553_v22 = vrot.slane %v1600_v31, 1  ;;  %v554_v55 = vrot.slane %v1601_v60, 1  ;;  %v594_v36 = vrot.slane %v1601_v60, 2 }
  0xec   : > { %916 = vrot.lane.b32.xlu0 %v552_v48, %s1800_s8 }
  0xed   : > { %v2417_v5 = vpop.permute.xlu1 %830  ;;  %v2419_v12 = vpop.permute.xlu0 %814 }
  0xef   : > { %978 = vrot.lane.b32.xlu1 %v610_v15, %s1801_s24 }
  0xf0   : > { %962 = vrot.lane.b32.xlu0 %v1909_v20, %s1801_s24 }
  0xf1   : > { %v973_v37 = vpop.permute.xlu1 %972  ;;  %v957_v42 = vpop.permute.xlu0 %956 }
  0xf2   : > { %v1131_v46 = vsel %vm1121_vm10, %v1114_v54, %v973_v37  ;;  %v1123_v52 = vsel %vm1121_vm10, %v1106_v9, %v957_v42  ;;  %v557_v54 = vsel %vm274_vm0, %v554_v55, %v556_v0  ;;  %v615_v9 = vsel %vm315_vm1, %v613_v30, %v614_v33 }
  0xf3   : > { %792 = vrot.lane.b32.xlu1 %v446_v53, %s1797_s5  ;;  %1680 = vmatmul.mubr.msk.f32.vlgmr.msra.gmra.mrb[0].mxu1 %vm1143_vm11, %v1131_v46  ;;  %v595_v46 = vsel %vm315_vm1, %v593_v35, %v594_v36 }
  0xf4   : > { %776 = vrot.lane.b32.xlu0 %v426_v51, %s1797_s5  ;;  %1668 = vmatmul.mubr.msk.f32.vlgmr.msra.gmra.mrb[0].mxu0 %vm1143_vm11, %v1123_v52  ;;  %v596_v52 = vrot.slane %v1602_v7, 2 }
  0xf5   : > { %v645_v13 = vpop.permute.xlu1 %644  ;;  %v629_v45 = vpop.permute.xlu0 %628 }
  0xf6   : > { %v1016_v29 = vsel %vm1002_vm3, %v1991_v1, %v645_v13  ;;  %v1008_v21 = vsel %vm1002_vm3, %v1994_v3, %v629_v45  ;;  %v555_v3 = vsel %vm274_vm0, %v553_v22, %v554_v55  ;;  %v597_v63 = vsel %vm315_vm1, %v594_v36, %v596_v52 }
  0xf7   : > { %838 = vrot.lane.b32.xlu1 %v610_v15, %s1798_s6 }
  0xf8   : > { %822 = vrot.lane.b32.xlu0 %v1909_v20, %s1798_s6  ;;  %v465_v20 = vrot.slane %v1576_v2, 2  ;;  %v1614_v2 = vld [vmem:[%s1866_s27 + $0xe8] sm:$0x3]  ;;  %s1557_s27 = sshll.u32 %s1776_s15, 3 }
  0xf9   : > { %v691_v18 = vpop.permute.xlu1 %690  ;;  %v675_v26 = vpop.permute.xlu0 %674  ;;  %v576_v1 = vrot.slane %v1614_v2, 1  ;;  %v616_v37 = vrot.slane %v1614_v2, 2  ;;  %p215_p6 = scmp.lt.s32.totalorder %s1557_s27, 15 }
  0xfa   : > { %v1032_v39 = vsel %vm1019_vm4, %v1015_v38, %v691_v18  ;;  %v1024_v23 = vsel %vm1019_vm4, %v1007_v4, %v675_v26  ;;  %v466_v11 = vsel %vm315_vm1, %v1893_v14, %v465_v20  ;;  %v574_v14 = vrot.slane %v1613_v57, 1 }
  0xfb   : > { %980 = vrot.lane.b32.xlu1 %v612_v8, %s1801_s24  ;;  %v617_v19 = vsel %vm315_vm1, %v614_v33, %v616_v37  ;;  %s2751_s27 = smov (!%p215_p6, %s1557_s27), 15 }
  0xfc   : > { %964 = vrot.lane.b32.xlu0 %v592_v27, %s1801_s24  ;;  %v575_v10 = vsel %vm274_vm0, %v573_v28, %v574_v14  ;;  %v577_v34 = vsel %vm274_vm0, %v574_v14, %v576_v1  ;;  %s1558_s28 = sshll.u32 %s2751_s27, 1 }
  0xfd   : > { %v2471_v59 = vpop.permute.xlu1 %832  ;;  %v2473_v40 = vpop.permute.xlu0 %816 }
  0xfe   : > { %v1082_v22 = vsel %vm1070_vm7, %v2393_v24, %v2471_v59  ;;  %v2734_v59 = vld [vmem:[#allocation2_spill] sm:$0xff] }
  0xff   : > { %840 = vrot.lane.b32.xlu1 %v486_v58, %s1798_s6 }
 0x100   : > { %824 = vrot.lane.b32.xlu0 %v466_v11, %s1798_s6  ;;  %s219_s6 = sadd.s32 %s1559_s29, %s1558_s28 }
 0x101   : > { %v2480_v50 = vpop.permute.xlu1 %878  ;;  %v2482_v43 = vpop.permute.xlu0 %862  ;;  %s1560_s15 = sshll.u32 %s219_s6, 3 }
 0x102   : > { %s2647_s10 = scalar_lea.vmem %s2725_s4, %s1560_s15 }
 0x103   : > { %886 = vrot.lane.b32.xlu1 %v1612_v49, %s1799_s7 }
 0x104   : > { %870 = vrot.lane.b32.xlu0 %v1600_v31, %s1799_s7 }
 0x105   : > { %v693_v47 = vpop.permute.xlu1 %692  ;;  %v677_v48 = vpop.permute.xlu0 %676 }
 0x106   : > { %v1033_v44 = vsel %vm1019_vm4, %v1016_v29, %v693_v47  ;;  %v1025_v32 = vsel %vm1019_vm4, %v1008_v21, %v677_v48  ;;  %v1074_v47 = vsel %vm1070_vm7, %v2396_v17, %v2473_v40 }
 0x107   : > { %888 = vrot.lane.b32.xlu1 %v1613_v57, %s1799_s7 }
 0x108   : > { %872 = vrot.lane.b32.xlu0 %v1601_v60, %s1799_s7 }
 0x109   : > { %v739_v15 = vpop.permute.xlu1 %738  ;;  %v723_v16 = vpop.permute.xlu0 %722 }
 0x10a   : > { %v1049_v6 = vsel %vm1036_vm5, %v1032_v39, %v739_v15  ;;  %v1041_v25 = vsel %vm1036_vm5, %v1024_v23, %v723_v16  ;;  %v1081_v39 = vsel %vm1070_vm7, %v2300_v62, %v2417_v5  ;;  %v1073_v23 = vsel %vm1070_vm7, %v2303_v61, %v2419_v12  ;;  %v2735_v15 = vld [vmem:[#allocation3_spill] sm:$0xff] }
 0x10b   : > { %934 = vrot.lane.b32.xlu1 %v575_v10, %s1800_s8  ;;  %v1098_v58 = vsel %vm1087_vm8, %v1081_v39, %v2480_v50  ;;  %v1090_v11 = vsel %vm1087_vm8, %v1073_v23, %v2482_v43 }
 0x10c   : > { %918 = vrot.lane.b32.xlu0 %v555_v3, %s1800_s8 }
 0x10d   : > { %v881_v41 = vpop.permute.xlu1 %880  ;;  %v865_v53 = vpop.permute.xlu0 %864 }
 0x10e   : > { %v1099_v48 = vsel %vm1087_vm8, %v1082_v22, %v881_v41  ;;  %v1091_v55 = vsel %vm1087_vm8, %v1074_v47, %v865_v53 }
 0x10f   : > { %936 = vrot.lane.b32.xlu1 %v577_v34, %s1800_s8 }
 0x110   : > { %920 = vrot.lane.b32.xlu0 %v557_v54, %s1800_s8 }
 0x111   : > { %v927_v42 = vpop.permute.xlu1 %926  ;;  %v911_v51 = vpop.permute.xlu0 %910 }
 0x112   : > { %v1115_v49 = vsel %vm1104_vm9, %v1098_v58, %v927_v42  ;;  %v1107_v31 = vsel %vm1104_vm9, %v1090_v11, %v911_v51 }
 0x113   : > { %982 = vrot.lane.b32.xlu1 %v615_v9, %s1801_s24 }
 0x114   : > { %966 = vrot.lane.b32.xlu0 %v595_v46, %s1801_s24 }
 0x115   : > { %v741_v13 = vpop.permute.xlu1 %740  ;;  %v725_v45 = vpop.permute.xlu0 %724 }
 0x116   : > { %v1050_v8 = vsel %vm1036_vm5, %v1033_v44, %v741_v13  ;;  %v1042_v56 = vsel %vm1036_vm5, %v1025_v32, %v725_v45 }
 0x117   : > { %984 = vrot.lane.b32.xlu1 %v617_v19, %s1801_s24 }
 0x118   : > { %968 = vrot.lane.b32.xlu0 %v597_v63, %s1801_s24 }
 0x119   : > { %v787_v38 = vpop.permute.xlu1 %786  ;;  %v771_v4 = vpop.permute.xlu0 %770 }
 0x11a   : > { %v2520_v18 = vsel %vm1053_vm6, %v1049_v6, %v787_v38  ;;  %v2523_v26 = vsel %vm1053_vm6, %v1041_v25, %v771_v4 }
 0x11d   : > { %v929_v27 = vpop.permute.xlu1 %928  ;;  %v913_v20 = vpop.permute.xlu0 %912 }
 0x11e   : > { %v1116_v2 = vsel %vm1104_vm9, %v1099_v48, %v929_v27  ;;  %v1108_v44 = vsel %vm1104_vm9, %v1091_v55, %v913_v20 }
 0x121   : > { %v975_v57 = vpop.permute.xlu1 %974  ;;  %v959_v60 = vpop.permute.xlu0 %958 }
 0x122   : > { %v1132_v28 = vsel %vm1121_vm10, %v1115_v49, %v975_v57  ;;  %v1124_v62 = vsel %vm1121_vm10, %v1107_v31, %v959_v60 }
 0x123   : > { %1670 = vmatprep.mubr.msk.f32.mxu0 %vm1143_vm11, %v1124_v62  ;;  %1682 = vmatprep.mubr.msk.f32.mxu1 %vm1143_vm11, %v1132_v28 }
 0x125   : > { %v647_v61 = vpop.permute.xlu1 %646  ;;  %v631_v5 = vpop.permute.xlu0 %630 }
 0x126   : > { %v1017_v40 = vsel %vm1002_vm3, %v2734_v59, %v647_v61  ;;  %v1009_v16 = vsel %vm1002_vm3, %v2735_v15, %v631_v5 }
 0x129   : > { %v789_v12 = vpop.permute.xlu1 %788  ;;  %v773_v50 = vpop.permute.xlu0 %772 }
 0x12a   : > { %v1067_v43 = vsel %vm1053_vm6, %v1050_v8, %v789_v12  ;;  %v1059_v14 = vsel %vm1053_vm6, %v1042_v56, %v773_v50 }
 0x12d   : > { %v835_v29 = vpop.permute.xlu1 %834  ;;  %v819_v21 = vpop.permute.xlu0 %818 }
 0x12e   : > { %v1083_v8 = vsel %vm1070_vm7, %v2520_v18, %v835_v29  ;;  %v1075_v56 = vsel %vm1070_vm7, %v2523_v26, %v819_v21 }
 0x131   : > { %v977_v32 = vpop.permute.xlu1 %976  ;;  %v961_v7 = vpop.permute.xlu0 %960 }
 0x132   : > { %v1133_v10 = vsel %vm1121_vm10, %v1116_v2, %v977_v32  ;;  %v1125_v1 = vsel %vm1121_vm10, %v1108_v44, %v961_v7 }
 0x133   : > { %1671 = vmatmul.mubr.msk.f32.gmra.mrb[2].mxu0 %vm1143_vm11, %v1125_v1  ;;  %1683 = vmatmul.mubr.msk.f32.gmra.mrb[2].mxu1 %vm1143_vm11, %v1133_v10 }
 0x135   : > { %v2557_v24 = vpop.permute.xlu1 %648  ;;  %v2559_v17 = vpop.permute.xlu0 %632 }
 0x139   : > { %v695_v3 = vpop.permute.xlu1 %694  ;;  %v679_v0 = vpop.permute.xlu0 %678 }
 0x13a   : > { %v1034_v6 = vsel %vm1019_vm4, %v1017_v40, %v695_v3  ;;  %v1026_v25 = vsel %vm1019_vm4, %v1009_v16, %v679_v0  ;;  %v2736_v40 = vld [vmem:[#allocation4_spill] sm:$0xff]  ;;  %v2737_v0 = vld [vmem:[#allocation5_spill] sm:$0xff] }
 0x13b   : > { %v1018_v15 = vsel %vm1002_vm3, %v2736_v40, %v2557_v24 }
 0x13d   : > { %v837_v30 = vpop.permute.xlu1 %836  ;;  %v821_v33 = vpop.permute.xlu0 %820 }
 0x13e   : > { %v1084_v57 = vsel %vm1070_vm7, %v1067_v43, %v837_v30  ;;  %v1076_v60 = vsel %vm1070_vm7, %v1059_v14, %v821_v33  ;;  %v1010_v30 = vsel %vm1002_vm3, %v2737_v0, %v2559_v17 }
 0x141   : > { %v883_v34 = vpop.permute.xlu1 %882  ;;  %v867_v35 = vpop.permute.xlu0 %866 }
 0x142   : > { %v1100_v38 = vsel %vm1087_vm8, %v1083_v8, %v883_v34  ;;  %v1092_v4 = vsel %vm1087_vm8, %v1075_v56, %v867_v35 }
 0x145   : > { %v697_v36 = vpop.permute.xlu1 %696  ;;  %v681_v41 = vpop.permute.xlu0 %680 }
 0x146   : > { %v1027_v34 = vsel %vm1019_vm4, %v1010_v30, %v681_v41 }
 0x149   : > { %v743_v53 = vpop.permute.xlu1 %742  ;;  %v727_v54 = vpop.permute.xlu0 %726 }
 0x14a   : > { %v1051_v32 = vsel %vm1036_vm5, %v1034_v6, %v743_v53  ;;  %v1043_v10 = vsel %vm1036_vm5, %v1026_v25, %v727_v54  ;;  %v1035_v6 = vsel %vm1019_vm4, %v1018_v15, %v697_v36 }
 0x14d   : > { %v885_v9 = vpop.permute.xlu1 %884  ;;  %v869_v37 = vpop.permute.xlu0 %868 }
 0x14e   : > { %v1101_v28 = vsel %vm1087_vm8, %v1084_v57, %v885_v9  ;;  %v1093_v62 = vsel %vm1087_vm8, %v1076_v60, %v869_v37 }
 0x151   : > { %v931_v42 = vpop.permute.xlu1 %930  ;;  %v915_v51 = vpop.permute.xlu0 %914 }
 0x152   : > { %v1117_v27 = vsel %vm1104_vm9, %v1100_v38, %v931_v42  ;;  %v1109_v39 = vsel %vm1104_vm9, %v1092_v4, %v915_v51 }
 0x155   : > { %v745_v46 = vpop.permute.xlu1 %744 }
 0x156   : > { %v729_v52 = vpop.permute.xlu0 %728  ;;  %v1052_v35 = vsel %vm1036_vm5, %v1035_v6, %v745_v46 }
 0x157   : > { %v1044_v9 = vsel %vm1036_vm5, %v1027_v34, %v729_v52 }
 0x159   : > { %v791_v19 = vpop.permute.xlu1 %790 }
 0x15a   : > { %v775_v13 = vpop.permute.xlu0 %774  ;;  %v1068_v1 = vsel %vm1053_vm6, %v1051_v32, %v791_v19 }
 0x15b   : > { %v1060_v16 = vsel %vm1053_vm6, %v1043_v10, %v775_v13 }
 0x15d   : > { %v933_v45 = vpop.permute.xlu1 %932 }
 0x15e   : > { %v917_v63 = vpop.permute.xlu0 %916  ;;  %v1118_v61 = vsel %vm1104_vm9, %v1101_v28, %v933_v45 }
 0x15f   : > { %v1110_v12 = vsel %vm1104_vm9, %v1093_v62, %v917_v63 }
 0x161   : > { %v979_v20 = vpop.permute.xlu1 %978 }
 0x162   : > { %v1134_v23 = vsel %vm1121_vm10, %v1117_v27, %v979_v20  ;;  %v963_v58 = vpop.permute.xlu0 %962  ;;  %v2630_v27 = vld [vmem:[%s2723_s2] ss:$0 sm:$0xff] }
 0x163   : > { %v1126_v11 = vsel %vm1121_vm10, %v1109_v39, %v963_v58  ;;  %1685 = vmatprep.mubr.msk.f32.mxu1 %vm1143_vm11, %v1134_v23  ;;  %v2635_v20 = vld [vmem:[%s2724_s3] ss:$0 sm:$0xff] }
 0x164   : > { %1673 = vmatprep.mubr.msk.f32.mxu0 %vm1143_vm11, %v1126_v11 }
 0x165   : > { %v793_v18 = vpop.permute.xlu1 %792 }
 0x166   : > { %v777_v26 = vpop.permute.xlu0 %776  ;;  %v1069_v37 = vsel %vm1053_vm6, %v1052_v35, %v793_v18 }
 0x167   : > { %v1061_v51 = vsel %vm1053_vm6, %v1044_v9, %v777_v26 }
 0x169   : > { %v839_v49 = vpop.permute.xlu1 %838 }
 0x16a   : > { %v823_v31 = vpop.permute.xlu0 %822  ;;  %v1085_v3 = vsel %vm1070_vm7, %v1068_v1, %v839_v49 }
 0x16b   : > { %v1077_v33 = vsel %vm1070_vm7, %v1060_v16, %v823_v31 }
 0x16d   : > { %v981_v5 = vpop.permute.xlu1 %980 }
 0x16e   : > { %v1135_v50 = vsel %vm1121_vm10, %v1118_v61, %v981_v5  ;;  %v965_v29 = vpop.permute.xlu0 %964 }
 0x16f   : > { %v1127_v21 = vsel %vm1121_vm10, %v1110_v12, %v965_v29  ;;  %1686 = vmatmul.mubr.msk.f32.gmra.mrb[4].mxu1 %vm1143_vm11, %v1135_v50 }
 0x170   : > { %1674 = vmatmul.mubr.msk.f32.gmra.mrb[4].mxu0 %vm1143_vm11, %v1127_v21 }
 0x171   : > { %v841_v43 = vpop.permute.xlu1 %840 }
 0x172   : > { %v825_v14 = vpop.permute.xlu0 %824  ;;  %v1086_v41 = vsel %vm1070_vm7, %v1069_v37, %v841_v43 }
 0x173   : > { %v1078_v19 = vsel %vm1070_vm7, %v1061_v51, %v825_v14 }
 0x175   : > { %v887_v22 = vpop.permute.xlu1 %886 }
 0x176   : > { %v871_v47 = vpop.permute.xlu0 %870  ;;  %v1102_v25 = vsel %vm1087_vm8, %v1085_v3, %v887_v22 }
 0x177   : > { %v1094_v24 = vsel %vm1087_vm8, %v1077_v33, %v871_v47 }
 0x179   : > { %v889_v48 = vpop.permute.xlu1 %888 }
 0x17a   : > { %v873_v55 = vpop.permute.xlu0 %872  ;;  %v1103_v52 = vsel %vm1087_vm8, %v1086_v41, %v889_v48 }
 0x17b   : > { %v1095_v13 = vsel %vm1087_vm8, %v1078_v19, %v873_v55 }
 0x17d   : > { %v935_v2 = vpop.permute.xlu1 %934 }
 0x17e   : > { %v919_v44 = vpop.permute.xlu0 %918  ;;  %v1119_v53 = vsel %vm1104_vm9, %v1102_v25, %v935_v2 }
 0x17f   : > { %v1111_v17 = vsel %vm1104_vm9, %v1094_v24, %v919_v44 }
 0x181   : > { %v937_v7 = vpop.permute.xlu1 %936 }
 0x182   : > { %v921_v59 = vpop.permute.xlu0 %920  ;;  %v1120_v45 = vsel %vm1104_vm9, %v1103_v52, %v937_v7 }
 0x183   : > { %v1112_v8 = vsel %vm1104_vm9, %v1095_v13, %v921_v59 }
 0x185   : > { %v983_v54 = vpop.permute.xlu1 %982 }
 0x186   : > { %v1136_v36 = vsel %vm1121_vm10, %v1119_v53, %v983_v54  ;;  %v967_v42 = vpop.permute.xlu0 %966 }
 0x187   : > { %v1128_v46 = vsel %vm1121_vm10, %v1111_v17, %v967_v42  ;;  %1688 = vmatprep.mubr.msk.f32.mxu1 %vm1143_vm11, %v1136_v36 }
 0x188   : > { %1676 = vmatprep.mubr.msk.f32.mxu0 %vm1143_vm11, %v1128_v46 }
 0x189   : > { %v985_v63 = vpop.permute.xlu1 %984 }
 0x18a   : > { %v1137_v56 = vsel %vm1121_vm10, %v1120_v45, %v985_v63  ;;  %v969_v38 = vpop.permute.xlu0 %968 }
 0x18b   : > { %v1129_v4 = vsel %vm1121_vm10, %v1112_v8, %v969_v38  ;;  %1689 = vmatmul.mubr.msk.f32.gmra.mrb[6].mxu1 %vm1143_vm11, %v1137_v56 }
 0x18c   : > { %1677 = vmatmul.mubr.msk.f32.gmra.mrb[6].mxu0 %vm1143_vm11, %v1129_v4 }
 0x1c6   : > { %v1681_v39 = vpop.f32.mrb[0].mxu1 }
 0x1c7   : > { %v1669_v23 = vpop.f32.mrb[0].mxu0  ;;  %v1357_v58 = vmul.f32 %v1681_v39, %v2630_v27  ;;  %v1302_v11 = vpop.f32.mrb[1].mxu1 }
 0x1c8   : > { %v1349_v18 = vmul.f32 %v1669_v23, %v2630_v27  ;;  %v1262_v26 = vpop.f32.mrb[1].mxu0  ;;  %v1356_v49 = vmul.f32 %v2630_v27, %v1302_v11 }
 0x1c9   : > { %v1380_v31 = vadd.f32 %v2635_v20, %v1357_v58  ;;  %v1348_v57 = vmul.f32 %v2630_v27, %v1262_v26 }
 0x1ca   : > { %v1372_v60 = vadd.f32 %v2635_v20, %v1349_v18  ;;  %v1379_v28 = vadd.f32 %v2635_v20, %v1356_v49 }
 0x1cb   : > { %vm1396_vm12 = vcmp.gt.f32.partialorder %v1380_v31, 0.0  ;;  %v1412_v62 = vmul.f32 0.1, %v1380_v31  ;;  %v1371_v61 = vadd.f32 %v2635_v20, %v1348_v57 }
 0x1cc   : > { %vm1388_vm13 = vcmp.gt.f32.partialorder %v1372_v60, 0.0  ;;  %v1404_v5 = vmul.f32 0.1, %v1372_v60  ;;  %vm1395_vm14 = vcmp.gt.f32.partialorder %v1379_v28, 0.0  ;;  %v1411_v12 = vmul.f32 0.1, %v1379_v28 }
 0x1cd   : > { %v1428_v50 = vsel %vm1396_vm12, %v1380_v31, %v1412_v62  ;;  %vm1387_vm15 = vcmp.gt.f32.partialorder %v1371_v61, 0.0  ;;  %v1403_v29 = vmul.f32 0.1, %v1371_v61 }
 0x1ce   : > { %v1420_v21 = vsel %vm1388_vm13, %v1372_v60, %v1404_v5  ;;  %1444 = vst.msk [vmem:[%s2647_s10 + $0x48] sm:$0xff] %vm1019_vm4, %v1428_v50  ;;  %v1427_v43 = vsel %vm1395_vm14, %v1379_v28, %v1411_v12 }
 0x1cf   : > { %1436 = vst.msk [vmem:[%s2647_s10 + $0x8] sm:$0xff] %vm1019_vm4, %v1420_v21  ;;  %v1419_v14 = vsel %vm1387_vm15, %v1371_v61, %v1403_v29  ;;  %1443 = vst.msk [vmem:[%s2647_s10 + $0x40] sm:$0xff] %vm1019_vm4, %v1427_v43 }
 0x1d0   : > { %1435 = vst.msk [vmem:[%s2647_s10] sm:$0xff] %vm1019_vm4, %v1419_v14 }
 0x206   : > { %v1672_v22 = vpop.f32.mrb[2].mxu0  ;;  %v1684_v47 = vpop.f32.mrb[2].mxu1 }
 0x207   : > { %v1351_v48 = vmul.f32 %v1672_v22, %v2630_v27  ;;  %v1359_v55 = vmul.f32 %v1684_v47, %v2630_v27  ;;  %v1272_v2 = vpop.f32.mrb[3].mxu0  ;;  %v1312_v44 = vpop.f32.mrb[3].mxu1 }
 0x208   : > { %v1350_v32 = vmul.f32 %v2630_v27, %v1272_v2  ;;  %v1358_v7 = vmul.f32 %v2630_v27, %v1312_v44 }
 0x209   : > { %v1374_v10 = vadd.f32 %v2635_v20, %v1351_v48  ;;  %v1382_v1 = vadd.f32 %v2635_v20, %v1359_v55 }
 0x20a   : > { %v1373_v59 = vadd.f32 %v2635_v20, %v1350_v32  ;;  %v1381_v40 = vadd.f32 %v2635_v20, %v1358_v7 }
 0x20b   : > { %vm1390_vm0 = vcmp.gt.f32.partialorder %v1374_v10, 0.0  ;;  %v1406_v15 = vmul.f32 0.1, %v1374_v10  ;;  %vm1398_vm1 = vcmp.gt.f32.partialorder %v1382_v1, 0.0  ;;  %v1414_v16 = vmul.f32 0.1, %v1382_v1 }
 0x20c   : > { %vm1389_vm2 = vcmp.gt.f32.partialorder %v1373_v59, 0.0  ;;  %v1405_v3 = vmul.f32 0.1, %v1373_v59  ;;  %vm1397_vm3 = vcmp.gt.f32.partialorder %v1381_v40, 0.0  ;;  %v1413_v0 = vmul.f32 0.1, %v1381_v40 }
 0x20d   : > { %v1422_v30 = vsel %vm1390_vm0, %v1374_v10, %v1406_v15  ;;  %v1430_v6 = vsel %vm1398_vm1, %v1382_v1, %v1414_v16 }
 0x20e   : > { %1438 = vst.msk [vmem:[%s2647_s10 + $0x18] sm:$0xff] %vm1019_vm4, %v1422_v30  ;;  %1446 = vst.msk [vmem:[%s2647_s10 + $0x58] sm:$0xff] %vm1019_vm4, %v1430_v6  ;;  %v1421_v33 = vsel %vm1389_vm2, %v1373_v59, %v1405_v3  ;;  %v1429_v25 = vsel %vm1397_vm3, %v1381_v40, %v1413_v0 }
 0x20f   : > { %1437 = vst.msk [vmem:[%s2647_s10 + $0x10] sm:$0xff] %vm1019_vm4, %v1421_v33  ;;  %1445 = vst.msk [vmem:[%s2647_s10 + $0x50] sm:$0xff] %vm1019_vm4, %v1429_v25 }
 0x242   : > { %v1687_v34 = vpop.f32.mrb[4].mxu1 }
 0x243   : > { %v1675_v35 = vpop.f32.mrb[4].mxu0  ;;  %v1361_v24 = vmul.f32 %v1687_v34, %v2630_v27  ;;  %v1322_v53 = vpop.f32.mrb[5].mxu1 }
 0x244   : > { %v1353_v54 = vmul.f32 %v1675_v35, %v2630_v27  ;;  %v1282_v9 = vpop.f32.mrb[5].mxu0  ;;  %v1360_v37 = vmul.f32 %v2630_v27, %v1322_v53 }
 0x245   : > { %v1384_v17 = vadd.f32 %v2635_v20, %v1361_v24  ;;  %v1352_v36 = vmul.f32 %v2630_v27, %v1282_v9 }
 0x246   : > { %v1376_v42 = vadd.f32 %v2635_v20, %v1353_v54  ;;  %v1383_v51 = vadd.f32 %v2635_v20, %v1360_v37 }
 0x247   : > { %vm1400_vm5 = vcmp.gt.f32.partialorder %v1384_v17, 0.0  ;;  %v1416_v41 = vmul.f32 0.1, %v1384_v17  ;;  %v1375_v46 = vadd.f32 %v2635_v20, %v1352_v36 }
 0x248   : > { %vm1392_vm6 = vcmp.gt.f32.partialorder %v1376_v42, 0.0  ;;  %v1408_v19 = vmul.f32 0.1, %v1376_v42  ;;  %vm1399_vm7 = vcmp.gt.f32.partialorder %v1383_v51, 0.0  ;;  %v1415_v52 = vmul.f32 0.1, %v1383_v51 }
 0x249   : > { %v1432_v13 = vsel %vm1400_vm5, %v1384_v17, %v1416_v41  ;;  %vm1391_vm8 = vcmp.gt.f32.partialorder %v1375_v46, 0.0  ;;  %v1407_v45 = vmul.f32 0.1, %v1375_v46 }
 0x24a   : > { %v1424_v63 = vsel %vm1392_vm6, %v1376_v42, %v1408_v19  ;;  %1448 = vst.msk [vmem:[%s2647_s10 + $0x68] sm:$0xff] %vm1019_vm4, %v1432_v13  ;;  %v1431_v8 = vsel %vm1399_vm7, %v1383_v51, %v1415_v52 }
 0x24b   : > { %1440 = vst.msk [vmem:[%s2647_s10 + $0x28] sm:$0xff] %vm1019_vm4, %v1424_v63  ;;  %v1423_v56 = vsel %vm1391_vm8, %v1375_v46, %v1407_v45  ;;  %1447 = vst.msk [vmem:[%s2647_s10 + $0x60] sm:$0xff] %vm1019_vm4, %v1431_v8 }
 0x24c   : > { %1439 = vst.msk [vmem:[%s2647_s10 + $0x20] sm:$0xff] %vm1019_vm4, %v1423_v56 }
 0x25e   : > { %v1690_v38 = vpop.f32.mrb[6].mxu1 }
 0x25f   : > { %v1678_v4 = vpop.f32.mrb[6].mxu0  ;;  %v1363_v39 = vmul.f32 %v1690_v38, %v2630_v27  ;;  %v1332_v23 = vpop.f32.mrb[7].mxu1 }
 0x260   : > { %v1355_v58 = vmul.f32 %v1678_v4, %v2630_v27  ;;  %v1292_v11 = vpop.f32.mrb[7].mxu0  ;;  %v1362_v18 = vmul.f32 %v2630_v27, %v1332_v23 }
 0x261   : > { %v1386_v26 = vadd.f32 %v2635_v20, %v1363_v39  ;;  %v1354_v49 = vmul.f32 %v2630_v27, %v1292_v11 }
 0x262   : > { %v1378_v31 = vadd.f32 %v2635_v20, %v1355_v58  ;;  %v1385_v57 = vadd.f32 %v2635_v20, %v1362_v18 }
 0x263   : > { %vm1402_vm9 = vcmp.gt.f32.partialorder %v1386_v26, 0.0  ;;  %v1418_v60 = vmul.f32 0.1, %v1386_v26  ;;  %v1377_v28 = vadd.f32 %v2635_v20, %v1354_v49 }
 0x264   : > { %vm1394_vm10 = vcmp.gt.f32.partialorder %v1378_v31, 0.0  ;;  %v1410_v62 = vmul.f32 0.1, %v1378_v31  ;;  %vm1401_vm11 = vcmp.gt.f32.partialorder %v1385_v57, 0.0  ;;  %v1417_v61 = vmul.f32 0.1, %v1385_v57 }
 0x265   : > { %v1434_v5 = vsel %vm1402_vm9, %v1386_v26, %v1418_v60  ;;  %vm1393_vm12 = vcmp.gt.f32.partialorder %v1377_v28, 0.0  ;;  %v1409_v12 = vmul.f32 0.1, %v1377_v28 }
 0x266   : > { %v1426_v50 = vsel %vm1394_vm10, %v1378_v31, %v1410_v62  ;;  %1450 = vst.msk [vmem:[%s2647_s10 + $0x78] sm:$0xff] %vm1019_vm4, %v1434_v5  ;;  %v1433_v27 = vsel %vm1401_vm11, %v1385_v57, %v1417_v61 }
 0x267   : > { %1442 = vst.msk [vmem:[%s2647_s10 + $0x38] sm:$0xff] %vm1019_vm4, %v1426_v50  ;;  %v1425_v29 = vsel %vm1393_vm12, %v1377_v28, %v1409_v12  ;;  %1449 = vst.msk [vmem:[%s2647_s10 + $0x70] sm:$0xff] %vm1019_vm4, %v1433_v27 }
 0x268   : > { %1441 = vst.msk [vmem:[%s2647_s10 + $0x30] sm:$0xff] %vm1019_vm4, %v1425_v29 }
 0x269 PF: > { %s14_s19 = sadd.s32 1, %s1792_s19   ;;  %s2738_s15 = smov %s1784_s17 }
 0x26a   : > { %p11_p7 = scmp.ge.s32.totalorder %s14_s19, 6   ;;  %s2739_s16 = smov %s1788_s18 }
 0x26b   : > { %s2740_s17 = smov %s2743_s20  ;;  %s2741_s18 = smov %s2747_s21 }
 0x26c   :  { %13 = sbr.rel (!%p11_p7) target bundleno = 3 (0x3), region = 69 }

</bundles_post_ra>
